<compile_context>
chip_gen: v7x
topology: tpu7x:2x2x1
jax: 0.10.0
libtpu: 0.0.40
codegen_flags: <defaults>
</compile_context>

<pallas_src>
import functools

import jax
import jax.numpy as jnp
from jax.experimental import pallas as pl
from jax.experimental.pallas import tpu as pltpu


def _cdiv(a: int, b: int) -> int:
    return -(-a // b)


def _round_up(x: int, m: int) -> int:
    return _cdiv(x, m) * m


def _choose_tiles(B: int, D: int, target_elems=None):
    """Pick (TB, TK, n_batch_tiles, n_feat_tiles).

    TB (batch rows per tile) is a multiple of 128 so the lane-dense (1, TB)
    output block is aligned; TK (feature chunk) is the full D whenever a
    >=128-row tile fits the per-buffer budget, otherwise a 128-multiple chunk
    (adds a reduction grid axis over D).  The budget is in elements
    (~4 MiB of f32) so double-buffered x tiles plus in-kernel f32 intermediates
    stay well inside the 32 MiB scoped-VMEM limit on v5e / v6e / v7x.
    """
    if target_elems is None:
        target_elems = (4 * 1024 * 1024) // 4          # ~4 MiB f32-equivalent
    target_elems = max(int(target_elems), 128 * 128)

    if 128 * D <= target_elems:
        tk = D                                          # single feature chunk
    else:
        tk = max(128, ((target_elems // 128) // 128) * 128)
    n_k = _cdiv(D, tk)

    tb = max(128, ((target_elems // tk) // 128) * 128)
    tb = min(tb, _round_up(B, 128))
    # Keep >= 4 batch tiles (2 per TensorCore on v7x megacore) when that still
    # leaves >= 1 MiB-equivalent tiles per step.
    quarter = max(128, _round_up(_cdiv(B, 4), 128))
    if quarter * tk >= (1024 * 1024) // 4:
        tb = min(tb, quarter)
    n_b = _cdiv(B, tb)
    return tb, tk, n_b, n_k


def _logreg_kernel(x_ref, w_ref, b_ref, o_ref, *, feat_dim, feat_tile, n_k):
    # x_ref: (TB, TK) native dtype (VMEM)    w_ref: (1, TK) native dtype (VMEM)
    # b_ref: (1,) f32 (SMEM)                 o_ref: (1, TB) f32 (VMEM, lane-dense)
    x = x_ref[...].astype(jnp.float32)        # in-kernel upcast: free VPU op
    w = w_ref[...].astype(jnp.float32)        # (1, TK) broadcasts over sublanes

    if n_k == 1:
        # Single feature chunk: multiply, lane-reduce, bias, sigmoid, store.
        logits = jnp.sum(x * w, axis=-1)[None, :] + b_ref[0]     # (1, TB)
        o_ref[...] = jax.nn.sigmoid(logits)
    else:
        k = pl.program_id(1)

        @pl.when(k == 0)
        def _init():
            o_ref[...] = jnp.zeros_like(o_ref)

        prod = x * w                                              # (TB, TK) on VPU
        if feat_dim % feat_tile != 0:
            # Ragged feature tail: the last chunk's out-of-bounds lanes hold
            # garbage; mask the product so they never reach the sum.
            lane = jax.lax.broadcasted_iota(jnp.int32, prod.shape, 1)
            prod = jnp.where(lane < feat_dim - k * feat_tile, prod, 0.0)
        o_ref[...] += jnp.sum(prod, axis=-1)[None, :]             # lane-dense accumulate

        @pl.when(k == n_k - 1)
        def _finalize():
            o_ref[...] = jax.nn.sigmoid(o_ref[...] + b_ref[0])


def logistic_regression_probe(x, weight, bias, *, target_tile_elems=None):
    """sigmoid(x @ weight.T + bias), matching torch.sigmoid(nn.Linear(D, 1)(x)).

    x:      (B, D)   float32 / bfloat16 (streamed in its native dtype)
    weight: (1, D)   PyTorch nn.Linear weight layout (kept as-is)
    bias:   (1,)
    returns (B, 1) float32
    """
    B, D = x.shape
    w = jnp.asarray(weight).reshape(1, D)                 # native dtype; upcast in-kernel
    b = jnp.asarray(bias).reshape(1).astype(jnp.float32)  # single scalar -> SMEM

    TB, TK, n_b, n_k = _choose_tiles(B, D, target_tile_elems)
    kernel = functools.partial(_logreg_kernel, feat_dim=D, feat_tile=TK, n_k=n_k)

    cost = pl.CostEstimate(
        flops=2 * B * D,
        transcendentals=B,
        bytes_accessed=B * D * x.dtype.itemsize + D * w.dtype.itemsize + B * 4 + 4,
    )

    out = pl.pallas_call(
        kernel,
        out_shape=jax.ShapeDtypeStruct((1, B), jnp.float32),
        grid_spec=pltpu.PrefetchScalarGridSpec(
            num_scalar_prefetch=0,
            grid=(n_b, n_k),
            in_specs=[
                pl.BlockSpec((TB, TK), lambda i, k: (i, k)),          # streamed x tiles
                # Weight chunk; block index is constant over the batch axis so it
                # is not re-fetched per batch tile.  (Single-buffering it would
                # only reclaim a few hundred KiB at most.)
                pl.BlockSpec((1, TK), lambda i, k: (0, k)),
                pl.BlockSpec(memory_space=pltpu.MemorySpace.SMEM),    # bias scalar
            ],
            out_specs=pl.BlockSpec((1, TB), lambda i, k: (0, i)),     # lane-dense slab
        ),
        compiler_params=pltpu.CompilerParams(
            dimension_semantics=("parallel", "arbitrary"),
            vmem_limit_bytes=32 * 1024 * 1024,
        ),
        cost_estimate=cost,
    )(x, w, b)
    return out.reshape(B, 1)


if __name__ == "__main__":
    key = jax.random.PRNGKey(0)
    kx, kw, kb, kx2, kx3, kw3, kb3 = jax.random.split(key, 7)

    # --- Test 1: small dense batch, matches nn.Linear(32, 1) on (8, 32). ---
    batch, input_dim = 8, 32
    x = jax.random.normal(kx, (batch, input_dim), dtype=jnp.float32)
    bound = 1.0 / (input_dim ** 0.5)
    weight = jax.random.uniform(kw, (1, input_dim), jnp.float32, -bound, bound)
    bias = jax.random.uniform(kb, (1,), jnp.float32, -bound, bound)

    out = jax.block_until_ready(logistic_regression_probe(x, weight, bias))
    ref = jax.nn.sigmoid(x @ weight.T + bias)
    assert out.shape == (batch, 1)
    assert jnp.allclose(out, ref, atol=1e-5, rtol=1e-5)

    # --- Test 2: ragged batch (partial tail batch block, no jnp.pad). ---
    batch2 = 37
    x2 = jax.random.normal(kx2, (batch2, input_dim), dtype=jnp.float32)
    out2 = jax.block_until_ready(logistic_regression_probe(x2, weight, bias))
    ref2 = jax.nn.sigmoid(x2 @ weight.T + bias)
    assert out2.shape == (batch2, 1)
    assert jnp.allclose(out2, ref2, atol=1e-5, rtol=1e-5)

    # --- Test 3: forced feature (K) tiling with a ragged masked tail chunk. ---
    batch3, input_dim3 = 19, 200
    x3 = jax.random.normal(kx3, (batch3, input_dim3), dtype=jnp.float32)
    bound3 = 1.0 / (input_dim3 ** 0.5)
    weight3 = jax.random.uniform(kw3, (1, input_dim3), jnp.float32, -bound3, bound3)
    bias3 = jax.random.uniform(kb3, (1,), jnp.float32, -bound3, bound3)
    out3 = jax.block_until_ready(
        logistic_regression_probe(x3, weight3, bias3, target_tile_elems=128 * 128))
    ref3 = jax.nn.sigmoid(x3 @ weight3.T + bias3)
    assert out3.shape == (batch3, 1)
    assert jnp.allclose(out3, ref3, atol=1e-5, rtol=1e-5)

    print("KERNEL_OK")
</pallas_src>

<mosaic_0001>
module attributes {stable_mosaic.version = 11 : i64} {
  func.func @_logreg_kernel(%arg0: i32, %arg1: i32, %arg2: memref<128x32xf32, #tpu.memory_space<vmem>>, %arg3: memref<1x32xf32, #tpu.memory_space<vmem>>, %arg4: memref<1xf32, #tpu.memory_space<smem>>, %arg5: memref<1x128xf32, #tpu.memory_space<vmem>>) attributes {dimension_semantics = [#tpu.dimension_semantics<parallel>, #tpu.dimension_semantics<arbitrary>], iteration_bounds = array<i64: 1, 1>, scalar_prefetch = 0 : i64, scratch_operands = 0 : i64, tpu.core_type = #tpu.core_type<tc>, window_params = [{transform_indices = @transform_0, window_bounds = array<i64: 128, 32>}, {transform_indices = @transform_1, window_bounds = array<i64: 1, 32>}, {transform_indices = @transform_2, window_bounds = array<i64: 1>}, {transform_indices = @transform_3, window_bounds = array<i64: 1, 128>}]} {
    %c0 = arith.constant 0 : index
    %c0_0 = arith.constant 0 : index
    %0 = vector.load %arg2[%c0, %c0_0] : memref<128x32xf32, #tpu.memory_space<vmem>>, vector<128x32xf32>
    %c0_1 = arith.constant 0 : index
    %c0_2 = arith.constant 0 : index
    %1 = vector.load %arg3[%c0_1, %c0_2] : memref<1x32xf32, #tpu.memory_space<vmem>>, vector<1x32xf32>
    %2 = vector.broadcast %1 : vector<1x32xf32> to vector<128x32xf32>
    %3 = arith.mulf %0, %2 : vector<128x32xf32>
    %cst = arith.constant dense<0.000000e+00> : vector<128xf32>
    %4 = vector.multi_reduction <add>, %3, %cst [1] : vector<128x32xf32> to vector<128xf32>
    %5 = vector.shape_cast %4 : vector<128xf32> to vector<1x128xf32>
    %c0_3 = arith.constant 0 : index
    %6 = memref.load %arg4[%c0_3] : memref<1xf32, #tpu.memory_space<smem>>
    %7 = vector.broadcast %6 : f32 to vector<1x128xf32>
    %8 = arith.addf %5, %7 : vector<1x128xf32>
    %9 = arith.negf %8 : vector<1x128xf32>
    %10 = math.exp %9 : vector<1x128xf32>
    %cst_4 = arith.constant 1.000000e+00 : f32
    %11 = vector.broadcast %cst_4 : f32 to vector<1x128xf32>
    %12 = arith.addf %11, %10 : vector<1x128xf32>
    %13 = arith.divf %11, %12 : vector<1x128xf32>
    %c0_5 = arith.constant 0 : index
    %c0_6 = arith.constant 0 : index
    %14 = vector.load %arg5[%c0_5, %c0_6] : memref<1x128xf32, #tpu.memory_space<vmem>>, vector<1x128xf32>
    tpu.vector_store %arg5[%c0_5, %c0_6], %13 {strides = array<i32>} : memref<1x128xf32, #tpu.memory_space<vmem>>, vector<1x128xf32>,
    return
  }
  func.func @transform_0(%arg0: i32, %arg1: i32) -> (i32, i32) {
    %c0_i32 = arith.constant 0 : i32
    return %arg0, %arg1 : i32, i32
  }
  func.func @transform_1(%arg0: i32, %arg1: i32) -> (i32, i32) {
    %c0_i32 = arith.constant 0 : i32
    %c0_i32_0 = arith.constant 0 : i32
    return %c0_i32, %arg1 : i32, i32
  }
  func.func @transform_2(%arg0: i32, %arg1: i32) -> i32 {
    %c0_i32 = arith.constant 0 : i32
    %c0_i32_0 = arith.constant 0 : i32
    return %c0_i32 : i32
  }
  func.func @transform_3(%arg0: i32, %arg1: i32) -> (i32, i32) {
    %c0_i32 = arith.constant 0 : i32
    %c0_i32_0 = arith.constant 0 : i32
    return %c0_i32, %arg0 : i32, i32
  }
}

</mosaic_0001>

<bundles_post_ra>
// kernel: tpu_custom_call.1
= control target key start
LH: loop header
LB: loop body
LE: loop exit
PB: predicated region body
PF: predicated region fallthrough
CT: control target
= control target key end

     0   :  { %9 = vsyncpa [#allocation4], 0  ;;  %s638_s0 = inlined_call_operand.hbm [shape: f32[8,32], index: 0, kind: input, shape index: {}]   ;;  %s639_s1 = inlined_call_operand.vmem [shape: f32[1,32], index: 1, kind: input, shape index: {}]   ;;  %s640_s2 = inlined_call_operand.<no memory space> [shape: f32[1], index: 2, kind: input, shape index: {}]   ;;  %s641_s3 = inlined_call_operand.hbm [shape: f32[1,8], index: 3, kind: output, shape index: {}]  }
   0x1   :  { %10 = vsyncpa [#allocation5], 0 }
   0x2   :  { %15 = vsyncadd [#allocation4], 1920  ;;  %s509_s12 = smov [#allocation3]   ;;  %s461_s16 = scalar_lea.hbm %s638_s0, 128 }
   0x3   :  { %s16_s13 = sshll.u32 %s509_s12, 4  ;;  %p462_p0 = scmp.ne.s32.totalorder %s638_s0, %s461_s16  ;;  %s17_s13 = int_to_ptr.vmem [resolvable:$true] %s16_s13 }
   0x4   :  { %p465_p1 = scmp.lt.u32.totalorder %s461_s16, %s638_s0 }
   0x6   :  { %p467_p2 = pnand %p465_p1, %p462_p0 }
   0x8   :  { %470 = shalt.err (!%p467_p2)
}
   0x9   :  { %s471_s21 = scalar_lea.vmem %s17_s13, 128  ;;  %s475_s22 = scalar_lea.vmem %s17_s13, 2048 }
   0xa   :  { %p472_p3 = scmp.ne.s32.totalorder %s17_s13, %s471_s21  ;;  %p476_p4 = scmp.lt.s32.totalorder %s17_s13, %s17_s13 }
   0xb   :  { %p477_p5 = scmp.lt.s32.totalorder %s475_s22, %s471_s21 }
   0xd   :  { %p478_p6 = por %p477_p5, %p476_p4 }
   0xf   :  { %p479_p7 = pnand %p478_p6, %p472_p3 }
  0x11   :  { %482 = shalt.err (!%p479_p7)
}
  0x12   :  { %s510_s23 = smov 128   ;;  %s511_s24 = smov 8  }
  0x13   :  { %22 = dma.hbm_to_vmem [thread:$0]  %s638_s0, 128, %s17_s13, [#allocation4], %s510_s23, %s510_s23, %s511_s24  }
  0x14   :  { %505 = dma.done.wait [#allocation4], 2048  }
  0x15   :  { %506 = vsyncadd [#allocation4], 4294965248  ;;  %v30_v0 = vld [vmem:[#allocation3] sm:$0xff]  ;;  %vm69_vm0 = vcmask 261120   ;;  %v32_v2 = vld [vmem:[#allocation3 + $0x10] sm:$0xff]  ;;  %v567_v49 = vstv %s640_s2  ;;  %vm259_vm1 = vcmask 130112  }
  0x16   :  { %v376_v1 = vld [vmem:[%s639_s1] ss:$0 sm:$0xff]  ;;  %v31_v5 = vld [vmem:[#allocation3 + $0x8] sm:$0xff]  ;;  %v33_v6 = vld [vmem:[#allocation3 + $0x18] sm:$0xff]  ;;  %vm266_vm2 = vcmask 195712   ;;  %vm273_vm3 = vcmask 261312  }
  0x17   :  { %v53_v3 = vmul.f32 %v376_v1, %v30_v0  ;;  %v55_v4 = vmul.f32 %v376_v1, %v32_v2  ;;  %v54_v7 = vmul.f32 %v376_v1, %v31_v5  ;;  %v56_v8 = vmul.f32 %v376_v1, %v33_v6  ;;  %v34_v9 = vld [vmem:[#allocation3 + $0x20] sm:$0xff]  ;;  %v35_v10 = vld [vmem:[#allocation3 + $0x28] sm:$0xff]  ;;  %v36_v17 = vld [vmem:[#allocation3 + $0x30] sm:$0xff]  ;;  %s512_s2 = smov [#allocation6]  }
  0x18   :  { %v57_v15 = vmul.f32 %v376_v1, %v34_v9  ;;  %v58_v16 = vmul.f32 %v376_v1, %v35_v10  ;;  %v37_v18 = vld [vmem:[#allocation3 + $0x38] sm:$0xff]  ;;  %v59_v21 = vmul.f32 %v376_v1, %v36_v17  ;;  %v38_v23 = vld [vmem:[#allocation3 + $0x40] sm:$0xff]  ;;  %v39_v24 = vld [vmem:[#allocation3 + $0x48] sm:$0xff]  ;;  %v248_v9 = vlaneseq  ;;  %s367_s29 = sshll.u32 %s512_s2, 4  ;;  %s368_s29 = int_to_ptr.vmem [resolvable:$true] %s367_s29 }
  0x19   :  { %v70_v11 = vsel %vm69_vm0, %v53_v3, 0.0  ;;  %v76_v12 = vsel %vm69_vm0, %v55_v4, 0.0  ;;  %v73_v13 = vsel %vm69_vm0, %v54_v7, 0.0  ;;  %v79_v14 = vsel %vm69_vm0, %v56_v8, 0.0  ;;  %v40_v29 = vld [vmem:[#allocation3 + $0x50] sm:$0xff]  ;;  %v41_v30 = vld [vmem:[#allocation3 + $0x58] sm:$0xff]  ;;  %p488_p9 = scmp.lt.s32.totalorder %s368_s29, %s368_s29 }
  0x1a   :  { %71 = vadd.xlane.f32.xlu0 %v70_v11  ;;  %77 = vadd.xlane.f32.xlu1 %v76_v12  ;;  %v82_v19 = vsel %vm69_vm0, %v57_v15, 0.0  ;;  %v85_v20 = vsel %vm69_vm0, %v58_v16, 0.0  ;;  %v60_v22 = vmul.f32 %v376_v1, %v37_v18  ;;  %v88_v25 = vsel %vm69_vm0, %v59_v21, 0.0  ;;  %v42_v35 = vld [vmem:[#allocation3 + $0x60] sm:$0xff]  ;;  %v43_v36 = vld [vmem:[#allocation3 + $0x68] sm:$0xff]  ;;  %v44_v41 = vld [vmem:[#allocation3 + $0x70] sm:$0xff] }
  0x1b   :  { %v61_v27 = vmul.f32 %v376_v1, %v38_v23  ;;  %v62_v28 = vmul.f32 %v376_v1, %v39_v24  ;;  %v63_v33 = vmul.f32 %v376_v1, %v40_v29  ;;  %v64_v34 = vmul.f32 %v376_v1, %v41_v30  ;;  %v45_v42 = vld [vmem:[#allocation3 + $0x78] sm:$0xff]  ;;  %s483_s30 = scalar_lea.vmem %s368_s29, 16  ;;  %s487_s4 = scalar_lea.vmem %s368_s29, 32 }
  0x1c   :  { %v91_v26 = vsel %vm69_vm0, %v60_v22, 0.0  ;;  %v65_v39 = vmul.f32 %v376_v1, %v42_v35  ;;  %v66_v40 = vmul.f32 %v376_v1, %v43_v36  ;;  %v67_v45 = vmul.f32 %v376_v1, %v44_v41  ;;  %p484_p8 = scmp.ne.s32.totalorder %s368_s29, %s483_s30  ;;  %p489_p10 = scmp.lt.s32.totalorder %s487_s4, %s483_s30 }
  0x1d   :  { %v94_v31 = vsel %vm69_vm0, %v61_v27, 0.0  ;;  %v97_v32 = vsel %vm69_vm0, %v62_v28, 0.0  ;;  %v100_v37 = vsel %vm69_vm0, %v63_v33, 0.0  ;;  %v103_v38 = vsel %vm69_vm0, %v64_v34, 0.0 }
  0x1e   :  { %74 = vadd.xlane.f32.xlu0 %v73_v13  ;;  %80 = vadd.xlane.f32.xlu1 %v79_v14  ;;  %v106_v43 = vsel %vm69_vm0, %v65_v39, 0.0  ;;  %v109_v44 = vsel %vm69_vm0, %v66_v40, 0.0  ;;  %v68_v46 = vmul.f32 %v376_v1, %v45_v42  ;;  %v112_v47 = vsel %vm69_vm0, %v67_v45, 0.0  ;;  %p490_p11 = por %p489_p10, %p488_p9 }
  0x1f   :  { %vm280_vm4 = vcmask 326912   ;;  %vm287_vm5 = vcmask 392512   ;;  %vm294_vm6 = vcmask 458112   ;;  %vm301_vm7 = vcmask 523712  }
  0x20   :  { %v115_v48 = vsel %vm69_vm0, %v68_v46, 0.0  ;;  %vm308_vm8 = vcmask 589312   ;;  %vm315_vm9 = vcmask 654912   ;;  %vm322_vm10 = vcmask 720512   ;;  %p491_p12 = pnand %p490_p11, %p484_p8 }
  0x21   :  { %vm329_vm11 = vcmask 786112   ;;  %vm336_vm12 = vcmask 851712   ;;  %vm343_vm13 = vcmask 917312   ;;  %vm350_vm14 = vcmask 982912  }
  0x22   :  { %83 = vadd.xlane.f32.xlu0 %v82_v19  ;;  %86 = vadd.xlane.f32.xlu1 %v85_v20  ;;  %v579_v20 = vand.u32 127, %v248_v9  ;;  %vm357_vm15 = vcmask 1048512  }
  0x24   :  { %v254_v35 = vadd.s32 4294967288, %v579_v20 }
  0x26   :  { %89 = vadd.xlane.f32.xlu0 %v88_v25  ;;  %92 = vadd.xlane.f32.xlu1 %v91_v26 }
  0x2a   :  { %95 = vadd.xlane.f32.xlu0 %v94_v31  ;;  %98 = vadd.xlane.f32.xlu1 %v97_v32  ;;  %v583_v31 = vshrl.u32 %v248_v9, 7  ;;  %v261_v32 = vadd.s32 4294967280, %v579_v20 }
  0x2c   :  { %v252_v45 = vsub.s32 %v579_v20, %v583_v31 }
  0x2e   :  { %101 = vadd.xlane.f32.xlu0 %v100_v37  ;;  %104 = vadd.xlane.f32.xlu1 %v103_v38 }
  0x32   :  { %107 = vadd.xlane.f32.xlu0 %v106_v43  ;;  %110 = vadd.xlane.f32.xlu1 %v109_v44  ;;  %v268_v43 = vadd.s32 4294967272, %v579_v20 }
  0x36   :  { %113 = vadd.xlane.f32.xlu0 %v112_v47  ;;  %116 = vadd.xlane.f32.xlu1 %v115_v48 }
  0xa7   :  { %v72_v50 = vpop.xlane.xlu0 %71  ;;  %v78_v51 = vpop.xlane.xlu1 %77 }
  0xa8   :  { %v120_v52 = vadd.f32 %v567_v49, %v72_v50  ;;  %v122_v53 = vadd.f32 %v567_v49, %v78_v51  ;;  %v264_v50 = vsub.s32 %v261_v32, %v583_v31  ;;  %v275_v51 = vadd.s32 4294967264, %v579_v20 }
  0xaa   :  { %v377_v54 = vmul.f32 -1.442695, %v120_v52  ;;  %v379_v55 = vmul.f32 -1.442695, %v122_v53 }
  0xab   :  { %v75_v56 = vpop.xlane.xlu0 %74  ;;  %v81_v57 = vpop.xlane.xlu1 %80 }
  0xac   :  { %397 = vpow2.f32 %v377_v54  ;;  %v121_v58 = vadd.f32 %v567_v49, %v75_v56  ;;  %v123_v59 = vadd.f32 %v567_v49, %v81_v57  ;;  %v257_v56 = vsub.s32 %v254_v35, %v583_v31 }
  0xad   :  { %399 = vpow2.f32 %v379_v55 }
  0xae   :  { %v378_v60 = vmul.f32 -1.442695, %v121_v58  ;;  %v380_v61 = vmul.f32 -1.442695, %v123_v59 }
  0xaf   :  { %v84_v62 = vpop.xlane.xlu0 %83  ;;  %v87_v63 = vpop.xlane.xlu1 %86 }
  0xb0   :  { %401 = vpow2.f32 %v378_v60  ;;  %v124_v0 = vadd.f32 %v567_v49, %v84_v62  ;;  %v125_v1 = vadd.f32 %v567_v49, %v87_v63  ;;  %v271_v60 = vsub.s32 %v268_v43, %v583_v31 }
  0xb1   :  { %403 = vpow2.f32 %v380_v61  ;;  %v282_v61 = vadd.s32 4294967256, %v579_v20 }
  0xb2   :  { %v381_v2 = vmul.f32 -1.442695, %v124_v0  ;;  %v382_v3 = vmul.f32 -1.442695, %v125_v1 }
  0xb3   :  { %v90_v4 = vpop.xlane.xlu0 %89  ;;  %v93_v5 = vpop.xlane.xlu1 %92 }
  0xb4   :  { %405 = vpow2.f32 %v381_v2  ;;  %v126_v6 = vadd.f32 %v567_v49, %v90_v4  ;;  %v127_v7 = vadd.f32 %v567_v49, %v93_v5  ;;  %v278_v2 = vsub.s32 %v275_v51, %v583_v31 }
  0xb5   :  { %407 = vpow2.f32 %v382_v3  ;;  %v331_v51 = vadd.s32 4294967200, %v579_v20 }
  0xb6   :  { %v398_v8 = vpop.eup %397  ;;  %v383_v10 = vmul.f32 -1.442695, %v126_v6  ;;  %v384_v13 = vmul.f32 -1.442695, %v127_v7  ;;  %v289_v7 = vadd.s32 4294967248, %v579_v20 }
  0xb7   :  { %v400_v11 = vpop.eup %399  ;;  %v184_v12 = vadd.f32 1.0, %v398_v8  ;;  %v96_v14 = vpop.xlane.xlu0 %95 }
  0xb8   :  { %v99_v15 = vpop.xlane.xlu1 %98  ;;  %v186_v16 = vadd.f32 1.0, %v400_v11  ;;  %409 = vpow2.f32 %v383_v10  ;;  %v128_v17 = vadd.f32 %v567_v49, %v96_v14  ;;  %v285_v11 = vsub.s32 %v282_v61, %v583_v31 }
  0xb9   :  { %v129_v18 = vadd.f32 %v567_v49, %v99_v15  ;;  %411 = vrcp.f32 %v184_v12  ;;  %v296_v14 = vadd.s32 4294967240, %v579_v20 }
  0xba   :  { %v402_v19 = vpop.eup %401  ;;  %413 = vrcp.f32 %v186_v16  ;;  %v385_v21 = vmul.f32 -1.442695, %v128_v17 }
  0xbb   :  { %v404_v22 = vpop.eup %403  ;;  %v185_v23 = vadd.f32 1.0, %v402_v19  ;;  %415 = vpow2.f32 %v384_v13  ;;  %v386_v24 = vmul.f32 -1.442695, %v129_v18  ;;  %v102_v25 = vpop.xlane.xlu0 %101  ;;  %v303_v18 = vadd.s32 4294967232, %v579_v20 }
  0xbc   :  { %v105_v26 = vpop.xlane.xlu1 %104  ;;  %v187_v27 = vadd.f32 1.0, %v404_v22  ;;  %417 = vpow2.f32 %v385_v21  ;;  %v130_v28 = vadd.f32 %v567_v49, %v102_v25 }
  0xbd   :  { %v131_v29 = vadd.f32 %v567_v49, %v105_v26  ;;  %419 = vrcp.f32 %v185_v23  ;;  %v292_v23 = vsub.s32 %v289_v7, %v583_v31  ;;  %v306_v32 = vsub.s32 %v303_v18, %v583_v31 }
  0xbe   :  { %v406_v30 = vpop.eup %405  ;;  %421 = vrcp.f32 %v187_v27  ;;  %v387_v33 = vmul.f32 -1.442695, %v130_v28  ;;  %v299_v27 = vsub.s32 %v296_v14, %v583_v31 }
  0xbf   :  { %v408_v34 = vpop.eup %407  ;;  %v188_v36 = vadd.f32 1.0, %v406_v30  ;;  %423 = vpow2.f32 %v386_v24  ;;  %v388_v37 = vmul.f32 -1.442695, %v131_v29  ;;  %v108_v38 = vpop.xlane.xlu0 %107 }
  0xc0   :  { %v111_v39 = vpop.xlane.xlu1 %110  ;;  %v189_v40 = vadd.f32 1.0, %v408_v34  ;;  %425 = vpow2.f32 %v387_v33  ;;  %v132_v41 = vadd.f32 %v567_v49, %v108_v38  ;;  %v310_v33 = vadd.s32 4294967224, %v579_v20 }
  0xc1   :  { %v133_v42 = vadd.f32 %v567_v49, %v111_v39  ;;  %427 = vrcp.f32 %v188_v36  ;;  %v317_v38 = vadd.s32 4294967216, %v579_v20 }
  0xc2   :  { %v410_v44 = vpop.eup %409  ;;  %429 = vrcp.f32 %v189_v40  ;;  %v389_v46 = vmul.f32 -1.442695, %v132_v41  ;;  %v324_v41 = vadd.s32 4294967208, %v579_v20 }
  0xc3   :  { %v390_v47 = vmul.f32 -1.442695, %v133_v42  ;;  %v412_v48 = vpop.eup %411  ;;  %v190_v52 = vadd.f32 1.0, %v410_v44  ;;  %431 = vpow2.f32 %v388_v37  ;;  %v114_v53 = vpop.xlane.xlu0 %113 }
  0xc4   :  { %v117_v54 = vpop.xlane.xlu1 %116  ;;  %v414_v55 = vpop.eup %413  ;;  %433 = vpow2.f32 %v389_v46  ;;  %v134_v57 = vadd.f32 %v567_v49, %v114_v53 }
  0xc5   :  { %v135_v58 = vadd.f32 %v567_v49, %v117_v54  ;;  %v416_v59 = vpop.eup %415  ;;  %435 = vrcp.f32 %v190_v52  ;;  %v253_v49 = vrot.slane %v412_v48, %v252_v45  ;;  %v265_v9 = vrot.slane %v414_v55, %v264_v50 }
  0xc6   :  { %v418_v62 = vpop.eup %417  ;;  %v191_v63 = vadd.f32 1.0, %v416_v59  ;;  %437 = vpow2.f32 %v390_v47  ;;  %v391_v0 = vmul.f32 -1.442695, %v134_v57  ;;  %v313_v45 = vsub.s32 %v310_v33, %v583_v31 }
  0xc7   :  { %v420_v1 = vpop.eup %419  ;;  %v192_v3 = vadd.f32 1.0, %v418_v62  ;;  %v392_v4 = vmul.f32 -1.442695, %v135_v58  ;;  %v320_v50 = vsub.s32 %v317_v38, %v583_v31  ;;  %v327_v55 = vsub.s32 %v324_v41, %v583_v31 }
  0xc8   :  { %v422_v5 = vpop.eup %421  ;;  %v258_v6 = vrot.slane %v420_v1, %v257_v56  ;;  %439 = vrcp.f32 %v191_v63  ;;  %v334_v63 = vsub.s32 %v331_v51, %v583_v31  ;;  %v345_v1 = vadd.s32 4294967184, %v579_v20 }
  0xc9   :  { %v424_v8 = vpop.eup %423  ;;  %v272_v10 = vrot.slane %v422_v5, %v271_v60  ;;  %441 = vrcp.f32 %v192_v3  ;;  %v338_v60 = vadd.s32 4294967192, %v579_v20 }
  0xca   :  { %v426_v12 = vpop.eup %425  ;;  %v260_v13 = vsel %vm259_vm1, %v258_v6, %v253_v49  ;;  %v193_v15 = vadd.f32 1.0, %v424_v8  ;;  %443 = vpow2.f32 %v391_v0  ;;  %v352_v49 = vadd.s32 4294967176, %v579_v20 }
  0xcb   :  { %v428_v16 = vpop.eup %427  ;;  %v267_v17 = vsel %vm266_vm2, %v265_v9, %v260_v13  ;;  %v194_v19 = vadd.f32 1.0, %v426_v12  ;;  %445 = vpow2.f32 %v392_v4  ;;  %v341_v5 = vsub.s32 %v338_v60, %v583_v31 }
  0xcc   :  { %v430_v21 = vpop.eup %429  ;;  %v279_v22 = vrot.slane %v428_v16, %v278_v2  ;;  %447 = vrcp.f32 %v193_v15  ;;  %v274_v25 = vsel %vm273_vm3, %v272_v10, %v267_v17  ;;  %v348_v9 = vsub.s32 %v345_v1, %v583_v31 }
  0xcd   :  { %v432_v24 = vpop.eup %431  ;;  %449 = vrcp.f32 %v194_v19  ;;  %v286_v30 = vrot.slane %v430_v21, %v285_v11  ;;  %v355_v12 = vsub.s32 %v352_v49, %v583_v31 }
  0xce   :  { %v434_v26 = vpop.eup %433  ;;  %v195_v28 = vadd.f32 1.0, %v432_v24  ;;  %v281_v36 = vsel %vm280_vm4, %v279_v22, %v274_v25 }
  0xcf   :  { %v436_v29 = vpop.eup %435  ;;  %v196_v34 = vadd.f32 1.0, %v434_v26  ;;  %v288_v43 = vsel %vm287_vm5, %v286_v30, %v281_v36 }
  0xd0   :  { %v438_v35 = vpop.eup %437  ;;  %v293_v37 = vrot.slane %v436_v29, %v292_v23  ;;  %451 = vrcp.f32 %v195_v28 }
  0xd1   :  { %453 = vrcp.f32 %v196_v34  ;;  %v197_v39 = vadd.f32 1.0, %v438_v35 }
  0xd2   :  { %v440_v40 = vpop.eup %439  ;;  %v295_v47 = vsel %vm294_vm6, %v293_v37, %v288_v43 }
  0xd3   :  { %v442_v42 = vpop.eup %441  ;;  %v300_v44 = vrot.slane %v440_v40, %v299_v27  ;;  %455 = vrcp.f32 %v197_v39 }
  0xd4   :  { %v444_v46 = vpop.eup %443  ;;  %v307_v48 = vrot.slane %v442_v42, %v306_v32 }
  0xd5   :  { %v446_v52 = vpop.eup %445  ;;  %v198_v53 = vadd.f32 1.0, %v444_v46  ;;  %v302_v58 = vsel %vm301_vm7, %v300_v44, %v295_v47 }
  0xd6   :  { %v448_v54 = vpop.eup %447  ;;  %v199_v56 = vadd.f32 1.0, %v446_v52  ;;  %v309_v62 = vsel %vm308_vm8, %v307_v48, %v302_v58 }
  0xd7   :  { %v450_v57 = vpop.eup %449  ;;  %v314_v59 = vrot.slane %v448_v54, %v313_v45  ;;  %457 = vrcp.f32 %v198_v53 }
  0xd8   :  { %v321_v61 = vrot.slane %v450_v57, %v320_v50  ;;  %459 = vrcp.f32 %v199_v56 }
  0xd9   :  { %v316_v4 = vsel %vm315_vm9, %v314_v59, %v309_v62 }
  0xda   :  { %v452_v0 = vpop.eup %451  ;;  %v323_v6 = vsel %vm322_vm10, %v321_v61, %v316_v4 }
  0xdb   :  { %v454_v2 = vpop.eup %453  ;;  %v328_v3 = vrot.slane %v452_v0, %v327_v55 }
  0xdc   :  { %v335_v7 = vrot.slane %v454_v2, %v334_v63 }
  0xdd   :  { %v456_v8 = vpop.eup %455  ;;  %v330_v10 = vsel %vm329_vm11, %v328_v3, %v323_v6 }
  0xde   :  { %v342_v11 = vrot.slane %v456_v8, %v341_v5  ;;  %v337_v13 = vsel %vm336_vm12, %v335_v7, %v330_v10 }
  0xe0   :  { %v344_v20 = vsel %vm343_vm13, %v342_v11, %v337_v13 }
  0xe1   :  { %v458_v14 = vpop.eup %457 }
  0xe2   :  { %v460_v15 = vpop.eup %459  ;;  %v349_v16 = vrot.slane %v458_v14, %v348_v9 }
  0xe3   :  { %v356_v17 = vrot.slane %v460_v15, %v355_v12 }
  0xe4   :  { %v351_v18 = vsel %vm350_vm14, %v349_v16, %v344_v20 }
  0xe5   :  { %v358_v19 = vsel %vm357_vm15, %v356_v17, %v351_v18 }
  0xe6   :  { %360 = vst [vmem:[#allocation6] sm:$0x1] %v358_v19 }
  0xe7   :  { %494 = shalt.err (!%p491_p12)
}
  0xe8   :  { %s495_s7 = scalar_lea.hbm %s641_s3, 16 }
  0xe9   :  { %p496_p13 = scmp.ne.s32.totalorder %s641_s3, %s495_s7  ;;  %p499_p0 = scmp.lt.u32.totalorder %s495_s7, %s641_s3 }
  0xeb   :  { %p501_p1 = pnand %p499_p0, %p496_p13 }
  0xed   :  { %504 = shalt.err (!%p501_p1)
}
  0xee   :  { %370 = dma.vmem_to_hbm [thread:$0]  %s368_s29, 16, %s641_s3, [#allocation5]  }
  0xef   :  { %507 = dma.done.wait [#allocation5], 16  }
  0xf0   :  { %508 = vsyncadd [#allocation5], 4294967280 }
  0xf1   :  { %374 = vsyncpa [#allocation4], 1 }
  0xf2   :  { %375 = vsyncpa [#allocation5], 1 }

</bundles_post_ra>
